<compile_context>
chip_gen: v5e
topology: v5e:2x2
jax: 0.10.0
libtpu: 0.0.40
codegen_flags: <defaults>
</compile_context>

<pallas_src>
import functools
import math

import jax
import jax.numpy as jnp
from jax import lax
from jax.experimental import pallas as pl
from jax.experimental.pallas import tpu as pltpu


def mhsa_kernel(x_ref,
                wq_ref, wkv_ref, wmix_ref, w1_ref, w2_ref,
                vec_ref,
                o_ref,
                *, num_heads, dim_split, dim_emb, dim_in, dim_out, eps):
    f32 = jnp.float32
    bf16 = jnp.bfloat16

    x = x_ref[...].astype(f32)                       # (N, dim_in): one batch per grid step

    # --- unpack the single packed 1-D-parameter array (static sublane/lane slices) ---
    ln0_g = vec_ref[0:1, :dim_in]
    ln0_b = vec_ref[1:2, :dim_in]
    bq    = vec_ref[2:3, :dim_emb]
    bkv   = vec_ref[3:4, :2 * dim_emb]               # scale already folded into the K half
    bmix  = vec_ref[4:5, :dim_out]
    ln1_g = vec_ref[5:6, :dim_out]
    ln1_b = vec_ref[6:7, :dim_out]
    b1    = vec_ref[7:8, :4 * dim_out]
    b2    = vec_ref[8:9, :dim_out]

    def layernorm(v, g, b):
        mu = jnp.mean(v, axis=-1, keepdims=True)
        var = jnp.mean(jnp.square(v - mu), axis=-1, keepdims=True)
        return (v - mu) * lax.rsqrt(var + eps) * g + b

    # --- pre layer norm (query path only, as in the reference) ---
    xn = layernorm(x, ln0_g, ln0_b)

    # --- fused projections: Q from LN'd input, K|V fused from raw input ---
    # bf16 operands on the MXU, f32 accumulation; biases added in f32.
    q = jnp.dot(xn.astype(bf16), wq_ref[...], preferred_element_type=f32) + bq    # (N, E)
    kv = jnp.dot(x.astype(bf16), wkv_ref[...], preferred_element_type=f32) + bkv  # (N, 2E)

    q_b = q.astype(bf16)
    kv_b = kv.astype(bf16)

    # --- per-head attention (unmasked: one batch per grid step) ---
    # Scores / softmax stay in f32 (max-subtraction would overflow in bf16).
    qkT_dims = (((1,), (1,)), ((), ()))              # contract last dims: Q @ K^T
    o_heads = []
    # TODO(synk): convert to lax.fori_loop / head grid axis at production head counts
    # so per-head score/prob tensors are not simultaneously live.
    for h in range(num_heads):                       # static unroll, num_heads=4
        lo = h * dim_split
        qh = q_b[:, lo:lo + dim_split]                               # (N, ds)
        kh = kv_b[:, lo:lo + dim_split]                              # (N, ds), pre-scaled
        vh = kv_b[:, dim_emb + lo:dim_emb + lo + dim_split]          # (N, ds)

        s = lax.dot_general(qh, kh, qkT_dims, preferred_element_type=f32)  # (N, N)
        s = s - jnp.max(s, axis=-1, keepdims=True)
        p = jnp.exp(s)
        p = p * pl.reciprocal(jnp.sum(p, axis=-1, keepdims=True), approx=True)

        o_heads.append(jnp.dot(p.astype(bf16), vh, preferred_element_type=f32))   # (N, ds)

    # --- heads reassembled once, single full-contraction mix-heads matmul ---
    multihead = jnp.concatenate(o_heads, axis=-1).astype(bf16)        # (N, E)
    h_res = (jnp.dot(multihead, wmix_ref[...], preferred_element_type=f32)
             + bmix + q)                                              # residual: X_res = Q

    # --- rFF block (pre-LN): LN1 -> Linear -> GELU(tanh) -> Linear, residual ---
    h_ln = layernorm(h_res, ln1_g, ln1_b)
    e = jnp.dot(h_ln.astype(bf16), w1_ref[...], preferred_element_type=f32) + b1
    e = jax.nn.gelu(e, approximate=True)             # tanh GELU -> EUP slot
    e = jnp.dot(e.astype(bf16), w2_ref[...], preferred_element_type=f32) + b2

    o_ref[...] = (h_res + e).astype(o_ref.dtype)


def mhsa_forward(x, params, *, num_heads, eps=1e-5):
    B, N, dim_in = x.shape
    dim_emb = params["wq"].shape[1]
    dim_out = params["wmix"].shape[1]
    assert dim_emb % num_heads == 0
    dim_split = dim_emb // num_heads
    # The H + Q residual in the reference silently requires this.
    assert dim_out == dim_emb, "MAB residual (H + Q) requires dim_out == dim_emb"

    bf16 = jnp.bfloat16
    f32 = jnp.float32
    scale = 1.0 / math.sqrt(dim_in)   # NPT convention: softmax(A / sqrt(dim_KV)), dim_KV == dim_in

    # Host-side weight prep:
    #  * fold the score scale into the K projection (exact: K only feeds the scores),
    #  * fuse K|V, cast MXU-side weights to bf16 (1-D params stay f32).
    wq = params["wq"].astype(bf16)
    wkv = jnp.concatenate([params["wk"] * scale, params["wv"]], axis=1).astype(bf16)
    bkv = jnp.concatenate([params["bk"] * scale, params["bv"]], axis=1)
    wmix = params["wmix"].astype(bf16)
    w1 = params["w1"].astype(bf16)
    w2 = params["w2"].astype(bf16)

    # Pack every 1-D parameter (LN gains/biases + linear biases) into one padded
    # f32 array -> a single input DMA instead of nine.
    vec_w = max(dim_in, dim_emb, 2 * dim_emb, dim_out, 4 * dim_out)

    def row(v):
        v = jnp.asarray(v, f32).reshape(-1)
        return jnp.pad(v, (0, vec_w - v.shape[0]))

    vecs = jnp.stack([
        row(params["ln0_g"]), row(params["ln0_b"]),
        row(params["bq"]), row(bkv),
        row(params["bmix"]),
        row(params["ln1_g"]), row(params["ln1_b"]),
        row(params["b1"]), row(params["b2"]),
    ], axis=0)                                        # (9, vec_w) f32

    kern = functools.partial(
        mhsa_kernel,
        num_heads=num_heads, dim_split=dim_split,
        dim_emb=dim_emb, dim_in=dim_in, dim_out=dim_out, eps=eps,
    )

    def resident(arr):
        nd = arr.ndim
        # Constant index_map: block stays resident in VMEM across all grid steps.
        return pl.BlockSpec(arr.shape, lambda b, _nd=nd: (0,) * _nd)

    out = pl.pallas_call(
        kern,
        out_shape=jax.ShapeDtypeStruct((B, N, dim_out), x.dtype),
        grid_spec=pltpu.PrefetchScalarGridSpec(
            num_scalar_prefetch=0,
            grid=(B,),
            in_specs=[pl.BlockSpec((None, N, dim_in), lambda b: (b, 0, 0)),
                      resident(wq), resident(wkv), resident(wmix),
                      resident(w1), resident(w2), resident(vecs)],
            out_specs=pl.BlockSpec((None, N, dim_out), lambda b: (b, 0, 0)),
        ),
        compiler_params=pltpu.CompilerParams(
            # batch axis is embarrassingly parallel -> megacore shard on v7x.
            dimension_semantics=("parallel",),
            vmem_limit_bytes=32 << 20,
        ),
    )(x, wq, wkv, wmix, w1, w2, vecs)
    return out


def mhsa_reference(x, params, *, num_heads, eps=1e-5):
    """Plain-JAX f32 reference reproducing the PyTorch forward, for verification."""
    dim_in = x.shape[-1]
    dim_emb = params["wq"].shape[1]
    ds = dim_emb // num_heads

    def ln(v, g, b):
        mu = jnp.mean(v, axis=-1, keepdims=True)
        var = jnp.mean((v - mu) ** 2, axis=-1, keepdims=True)
        return (v - mu) / jnp.sqrt(var + eps) * g[0] + b[0]

    xn = ln(x, params["ln0_g"], params["ln0_b"])
    q = xn @ params["wq"] + params["bq"][0]
    k = x @ params["wk"] + params["bk"][0]
    v = x @ params["wv"] + params["bv"][0]

    B, N, _ = q.shape
    qh = q.reshape(B, N, num_heads, ds).transpose(0, 2, 1, 3)
    kh = k.reshape(B, N, num_heads, ds).transpose(0, 2, 1, 3)
    vh = v.reshape(B, N, num_heads, ds).transpose(0, 2, 1, 3)
    a = jnp.einsum("bhnd,bhmd->bhnm", qh, kh) / math.sqrt(dim_in)
    a = jax.nn.softmax(a, axis=-1)
    o = jnp.einsum("bhnm,bhmd->bhnd", a, vh)
    multihead = o.transpose(0, 2, 1, 3).reshape(B, N, dim_emb)

    h = multihead @ params["wmix"] + params["bmix"][0]
    h = h + q
    h_ln = ln(h, params["ln1_g"], params["ln1_b"])
    e = h_ln @ params["w1"] + params["b1"][0]
    e = 0.5 * e * (1.0 + lax.erf(e / jnp.sqrt(2.0)))
    e = e @ params["w2"] + params["b2"][0]
    return h + e


def init_params(key, dim_in, dim_emb, dim_out):
    ks = jax.random.split(key, 8)
    s = 0.05

    def lin(k, din, dout):
        kw, kb = jax.random.split(k)
        w = jax.random.normal(kw, (din, dout), jnp.float32) * s
        b = jax.random.normal(kb, (1, dout), jnp.float32) * s
        return w, b

    wq, bq = lin(ks[0], dim_in, dim_emb)
    wk, bk = lin(ks[1], dim_in, dim_emb)
    wv, bv = lin(ks[2], dim_in, dim_emb)
    wmix, bmix = lin(ks[3], dim_emb, dim_out)
    w1, b1 = lin(ks[4], dim_out, 4 * dim_out)
    w2, b2 = lin(ks[5], 4 * dim_out, dim_out)
    return {
        "ln0_g": jnp.ones((1, dim_in), jnp.float32),
        "ln0_b": jnp.zeros((1, dim_in), jnp.float32),
        "wq": wq, "bq": bq, "wk": wk, "bk": bk, "wv": wv, "bv": bv,
        "wmix": wmix, "bmix": bmix,
        "ln1_g": jnp.ones((1, dim_out), jnp.float32),
        "ln1_b": jnp.zeros((1, dim_out), jnp.float32),
        "w1": w1, "b1": b1, "w2": w2, "b2": b2,
    }


if __name__ == "__main__":
    # Small shapes consistent with the module: X is (B, N, dim_in).
    B, N = 2, 8
    dim_in, dim_emb, dim_out = 32, 32, 32   # dim_out == dim_emb required by H + Q residual
    num_heads = 4

    key = jax.random.PRNGKey(0)
    kx, kp = jax.random.split(key)
    x = jax.random.normal(kx, (B, N, dim_in), jnp.float32)
    params = init_params(kp, dim_in, dim_emb, dim_out)

    out = mhsa_forward(x, params, num_heads=num_heads)
    out = jax.block_until_ready(out)

    ref = mhsa_reference(x, params, num_heads=num_heads)
    assert out.shape == (B, N, dim_out)
    # Tolerance accounts for bf16 MXU operands, tanh-GELU and the approx softmax
    # reciprocal (all sanctioned by the perf review); f32 reference.
    max_err = jnp.max(jnp.abs(out - ref))
    assert jnp.allclose(out, ref, atol=2e-2, rtol=2e-2), (
        f"mismatch vs JAX reference (max abs err = {max_err})")

    print("KERNEL_OK")
</pallas_src>

<mosaic_0001>
module attributes {stable_mosaic.version = 11 : i64} {
  func.func @mhsa_kernel(%arg0: i32, %arg1: memref<1x8x32xf32, #tpu.memory_space<vmem>>, %arg2: memref<32x32xbf16, #tpu.memory_space<vmem>>, %arg3: memref<32x64xbf16, #tpu.memory_space<vmem>>, %arg4: memref<32x32xbf16, #tpu.memory_space<vmem>>, %arg5: memref<32x128xbf16, #tpu.memory_space<vmem>>, %arg6: memref<128x32xbf16, #tpu.memory_space<vmem>>, %arg7: memref<9x128xf32, #tpu.memory_space<vmem>>, %arg8: memref<1x8x32xf32, #tpu.memory_space<vmem>>) attributes {dimension_semantics = [#tpu.dimension_semantics<parallel>], iteration_bounds = array<i64: 2>, scalar_prefetch = 0 : i64, scratch_operands = 0 : i64, tpu.core_type = #tpu.core_type<tc>, window_params = [{transform_indices = @transform_0, window_bounds = array<i64: 1, 8, 32>}, {pipeline_mode = #tpu.pipeline_mode<synchronous>, transform_indices = @transform_1, window_bounds = array<i64: 32, 32>}, {pipeline_mode = #tpu.pipeline_mode<synchronous>, transform_indices = @transform_2, window_bounds = array<i64: 32, 64>}, {pipeline_mode = #tpu.pipeline_mode<synchronous>, transform_indices = @transform_3, window_bounds = array<i64: 32, 32>}, {pipeline_mode = #tpu.pipeline_mode<synchronous>, transform_indices = @transform_4, window_bounds = array<i64: 32, 128>}, {pipeline_mode = #tpu.pipeline_mode<synchronous>, transform_indices = @transform_5, window_bounds = array<i64: 128, 32>}, {pipeline_mode = #tpu.pipeline_mode<synchronous>, transform_indices = @transform_6, window_bounds = array<i64: 9, 128>}, {transform_indices = @transform_7, window_bounds = array<i64: 1, 8, 32>}]} {
    %c0 = arith.constant 0 : index
    %c0_0 = arith.constant 0 : index
    %c0_1 = arith.constant 0 : index
    %0 = vector.load %arg1[%c0, %c0_0, %c0_1] : memref<1x8x32xf32, #tpu.memory_space<vmem>>, vector<1x8x32xf32>
    %1 = vector.shape_cast %0 : vector<1x8x32xf32> to vector<8x32xf32>
    %c0_2 = arith.constant 0 : index
    %c0_3 = arith.constant 0 : index
    %2 = vector.load %arg7[%c0_2, %c0_3] : memref<9x128xf32, #tpu.memory_space<vmem>>, vector<1x32xf32>
    %c1 = arith.constant 1 : index
    %c0_4 = arith.constant 0 : index
    %3 = vector.load %arg7[%c1, %c0_4] : memref<9x128xf32, #tpu.memory_space<vmem>>, vector<1x32xf32>
    %c2 = arith.constant 2 : index
    %c0_5 = arith.constant 0 : index
    %4 = vector.load %arg7[%c2, %c0_5] : memref<9x128xf32, #tpu.memory_space<vmem>>, vector<1x32xf32>
    %c3 = arith.constant 3 : index
    %c0_6 = arith.constant 0 : index
    %5 = vector.load %arg7[%c3, %c0_6] : memref<9x128xf32, #tpu.memory_space<vmem>>, vector<1x64xf32>
    %c4 = arith.constant 4 : index
    %c0_7 = arith.constant 0 : index
    %6 = vector.load %arg7[%c4, %c0_7] : memref<9x128xf32, #tpu.memory_space<vmem>>, vector<1x32xf32>
    %c5 = arith.constant 5 : index
    %c0_8 = arith.constant 0 : index
    %7 = vector.load %arg7[%c5, %c0_8] : memref<9x128xf32, #tpu.memory_space<vmem>>, vector<1x32xf32>
    %c6 = arith.constant 6 : index
    %c0_9 = arith.constant 0 : index
    %8 = vector.load %arg7[%c6, %c0_9] : memref<9x128xf32, #tpu.memory_space<vmem>>, vector<1x32xf32>
    %c7 = arith.constant 7 : index
    %c0_10 = arith.constant 0 : index
    %9 = vector.load %arg7[%c7, %c0_10] : memref<9x128xf32, #tpu.memory_space<vmem>>, vector<1x128xf32>
    %c8 = arith.constant 8 : index
    %c0_11 = arith.constant 0 : index
    %10 = vector.load %arg7[%c8, %c0_11] : memref<9x128xf32, #tpu.memory_space<vmem>>, vector<1x32xf32>
    %cst = arith.constant dense<0.000000e+00> : vector<8xf32>
    %11 = vector.multi_reduction <add>, %1, %cst [1] : vector<8x32xf32> to vector<8xf32>
    %12 = vector.shape_cast %11 : vector<8xf32> to vector<8x1xf32>
    %cst_12 = arith.constant 3.200000e+01 : f32
    %13 = vector.broadcast %cst_12 : f32 to vector<8x1xf32>
    %14 = arith.divf %12, %13 : vector<8x1xf32>
    %15 = vector.broadcast %14 : vector<8x1xf32> to vector<8x32xf32>
    %16 = arith.subf %1, %15 : vector<8x32xf32>
    %17 = arith.mulf %16, %16 : vector<8x32xf32>
    %cst_13 = arith.constant dense<0.000000e+00> : vector<8xf32>
    %18 = vector.multi_reduction <add>, %17, %cst_13 [1] : vector<8x32xf32> to vector<8xf32>
    %19 = vector.shape_cast %18 : vector<8xf32> to vector<8x1xf32>
    %cst_14 = arith.constant 3.200000e+01 : f32
    %20 = vector.broadcast %cst_14 : f32 to vector<8x1xf32>
    %21 = arith.divf %19, %20 : vector<8x1xf32>
    %22 = vector.broadcast %14 : vector<8x1xf32> to vector<8x32xf32>
    %23 = arith.subf %1, %22 : vector<8x32xf32>
    %cst_15 = arith.constant 9.99999974E-6 : f32
    %24 = vector.broadcast %cst_15 : f32 to vector<8x1xf32>
    %25 = arith.addf %21, %24 : vector<8x1xf32>
    %26 = math.rsqrt %25 : vector<8x1xf32>
    %27 = vector.broadcast %26 : vector<8x1xf32> to vector<8x32xf32>
    %28 = arith.mulf %23, %27 : vector<8x32xf32>
    %29 = vector.broadcast %2 : vector<1x32xf32> to vector<8x32xf32>
    %30 = arith.mulf %28, %29 : vector<8x32xf32>
    %31 = vector.broadcast %3 : vector<1x32xf32> to vector<8x32xf32>
    %32 = arith.addf %30, %31 : vector<8x32xf32>
    %33 = arith.truncf %32 : vector<8x32xf32> to vector<8x32xbf16>
    %c0_16 = arith.constant 0 : index
    %c0_17 = arith.constant 0 : index
    %34 = vector.load %arg2[%c0_16, %c0_17] : memref<32x32xbf16, #tpu.memory_space<vmem>>, vector<32x32xbf16>
    %cst_18 = arith.constant dense<0.000000e+00> : vector<8x32xf32>
    %35 = tpu.matmul %33, %34, %cst_18 {dimension_numbers = #tpu.dot_dimension_numbers<[1], [0], [0], [1], [0, 0, 1, 1], [], []>} : vector<8x32xbf16>, vector<32x32xbf16>, vector<8x32xf32> -> vector<8x32xf32>
    %36 = vector.broadcast %4 : vector<1x32xf32> to vector<8x32xf32>
    %37 = arith.addf %35, %36 : vector<8x32xf32>
    %38 = arith.truncf %1 : vector<8x32xf32> to vector<8x32xbf16>
    %c0_19 = arith.constant 0 : index
    %c0_20 = arith.constant 0 : index
    %39 = vector.load %arg3[%c0_19, %c0_20] : memref<32x64xbf16, #tpu.memory_space<vmem>>, vector<32x64xbf16>
    %cst_21 = arith.constant dense<0.000000e+00> : vector<8x64xf32>
    %40 = tpu.matmul %38, %39, %cst_21 {dimension_numbers = #tpu.dot_dimension_numbers<[1], [0], [0], [1], [0, 0, 1, 1], [], []>} : vector<8x32xbf16>, vector<32x64xbf16>, vector<8x64xf32> -> vector<8x64xf32>
    %41 = vector.broadcast %5 : vector<1x64xf32> to vector<8x64xf32>
    %42 = arith.addf %40, %41 : vector<8x64xf32>
    %43 = arith.truncf %37 : vector<8x32xf32> to vector<8x32xbf16>
    %44 = arith.truncf %42 : vector<8x64xf32> to vector<8x64xbf16>
    %45 = vector.extract_strided_slice %43 {offsets = [0, 0], sizes = [8, 8], strides = [1, 1]} : vector<8x32xbf16> to vector<8x8xbf16>
    %46 = vector.extract_strided_slice %44 {offsets = [0, 0], sizes = [8, 8], strides = [1, 1]} : vector<8x64xbf16> to vector<8x8xbf16>
    %47 = vector.extract_strided_slice %44 {offsets = [0, 32], sizes = [8, 8], strides = [1, 1]} : vector<8x64xbf16> to vector<8x8xbf16>
    %cst_22 = arith.constant dense<0.000000e+00> : vector<8x8xf32>
    %48 = tpu.matmul %45, %46, %cst_22 {dimension_numbers = #tpu.dot_dimension_numbers<[1], [1], [0], [0], [0, 0, 1, 0], [], []>} : vector<8x8xbf16>, vector<8x8xbf16>, vector<8x8xf32> -> vector<8x8xf32>
    %cst_23 = arith.constant dense<0xFF800000> : vector<8xf32>
    %49 = vector.multi_reduction <maximumf>, %48, %cst_23 [1] : vector<8x8xf32> to vector<8xf32>
    %50 = vector.shape_cast %49 : vector<8xf32> to vector<8x1xf32>
    %51 = vector.broadcast %50 : vector<8x1xf32> to vector<8x8xf32>
    %52 = arith.subf %48, %51 : vector<8x8xf32>
    %53 = math.exp %52 : vector<8x8xf32>
    %cst_24 = arith.constant dense<0.000000e+00> : vector<8xf32>
    %54 = vector.multi_reduction <add>, %53, %cst_24 [1] : vector<8x8xf32> to vector<8xf32>
    %55 = vector.shape_cast %54 : vector<8xf32> to vector<8x1xf32>
    %56 = tpu.reciprocal %55 {approx = true} : vector<8x1xf32> -> vector<8x1xf32>
    %57 = vector.broadcast %56 : vector<8x1xf32> to vector<8x8xf32>
    %58 = arith.mulf %53, %57 : vector<8x8xf32>
    %59 = arith.truncf %58 : vector<8x8xf32> to vector<8x8xbf16>
    %cst_25 = arith.constant dense<0.000000e+00> : vector<8x8xf32>
    %60 = tpu.matmul %59, %47, %cst_25 {dimension_numbers = #tpu.dot_dimension_numbers<[1], [0], [0], [1], [0, 0, 1, 1], [], []>} : vector<8x8xbf16>, vector<8x8xbf16>, vector<8x8xf32> -> vector<8x8xf32>
    %61 = vector.extract_strided_slice %43 {offsets = [0, 8], sizes = [8, 8], strides = [1, 1]} : vector<8x32xbf16> to vector<8x8xbf16>
    %62 = vector.extract_strided_slice %44 {offsets = [0, 8], sizes = [8, 8], strides = [1, 1]} : vector<8x64xbf16> to vector<8x8xbf16>
    %63 = vector.extract_strided_slice %44 {offsets = [0, 40], sizes = [8, 8], strides = [1, 1]} : vector<8x64xbf16> to vector<8x8xbf16>
    %cst_26 = arith.constant dense<0.000000e+00> : vector<8x8xf32>
    %64 = tpu.matmul %61, %62, %cst_26 {dimension_numbers = #tpu.dot_dimension_numbers<[1], [1], [0], [0], [0, 0, 1, 0], [], []>} : vector<8x8xbf16>, vector<8x8xbf16>, vector<8x8xf32> -> vector<8x8xf32>
    %cst_27 = arith.constant dense<0xFF800000> : vector<8xf32>
    %65 = vector.multi_reduction <maximumf>, %64, %cst_27 [1] : vector<8x8xf32> to vector<8xf32>
    %66 = vector.shape_cast %65 : vector<8xf32> to vector<8x1xf32>
    %67 = vector.broadcast %66 : vector<8x1xf32> to vector<8x8xf32>
    %68 = arith.subf %64, %67 : vector<8x8xf32>
    %69 = math.exp %68 : vector<8x8xf32>
    %cst_28 = arith.constant dense<0.000000e+00> : vector<8xf32>
    %70 = vector.multi_reduction <add>, %69, %cst_28 [1] : vector<8x8xf32> to vector<8xf32>
    %71 = vector.shape_cast %70 : vector<8xf32> to vector<8x1xf32>
    %72 = tpu.reciprocal %71 {approx = true} : vector<8x1xf32> -> vector<8x1xf32>
    %73 = vector.broadcast %72 : vector<8x1xf32> to vector<8x8xf32>
    %74 = arith.mulf %69, %73 : vector<8x8xf32>
    %75 = arith.truncf %74 : vector<8x8xf32> to vector<8x8xbf16>
    %cst_29 = arith.constant dense<0.000000e+00> : vector<8x8xf32>
    %76 = tpu.matmul %75, %63, %cst_29 {dimension_numbers = #tpu.dot_dimension_numbers<[1], [0], [0], [1], [0, 0, 1, 1], [], []>} : vector<8x8xbf16>, vector<8x8xbf16>, vector<8x8xf32> -> vector<8x8xf32>
    %77 = vector.extract_strided_slice %43 {offsets = [0, 16], sizes = [8, 8], strides = [1, 1]} : vector<8x32xbf16> to vector<8x8xbf16>
    %78 = vector.extract_strided_slice %44 {offsets = [0, 16], sizes = [8, 8], strides = [1, 1]} : vector<8x64xbf16> to vector<8x8xbf16>
    %79 = vector.extract_strided_slice %44 {offsets = [0, 48], sizes = [8, 8], strides = [1, 1]} : vector<8x64xbf16> to vector<8x8xbf16>
    %cst_30 = arith.constant dense<0.000000e+00> : vector<8x8xf32>
    %80 = tpu.matmul %77, %78, %cst_30 {dimension_numbers = #tpu.dot_dimension_numbers<[1], [1], [0], [0], [0, 0, 1, 0], [], []>} : vector<8x8xbf16>, vector<8x8xbf16>, vector<8x8xf32> -> vector<8x8xf32>
    %cst_31 = arith.constant dense<0xFF800000> : vector<8xf32>
    %81 = vector.multi_reduction <maximumf>, %80, %cst_31 [1] : vector<8x8xf32> to vector<8xf32>
    %82 = vector.shape_cast %81 : vector<8xf32> to vector<8x1xf32>
    %83 = vector.broadcast %82 : vector<8x1xf32> to vector<8x8xf32>
    %84 = arith.subf %80, %83 : vector<8x8xf32>
    %85 = math.exp %84 : vector<8x8xf32>
    %cst_32 = arith.constant dense<0.000000e+00> : vector<8xf32>
    %86 = vector.multi_reduction <add>, %85, %cst_32 [1] : vector<8x8xf32> to vector<8xf32>
    %87 = vector.shape_cast %86 : vector<8xf32> to vector<8x1xf32>
    %88 = tpu.reciprocal %87 {approx = true} : vector<8x1xf32> -> vector<8x1xf32>
    %89 = vector.broadcast %88 : vector<8x1xf32> to vector<8x8xf32>
    %90 = arith.mulf %85, %89 : vector<8x8xf32>
    %91 = arith.truncf %90 : vector<8x8xf32> to vector<8x8xbf16>
    %cst_33 = arith.constant dense<0.000000e+00> : vector<8x8xf32>
    %92 = tpu.matmul %91, %79, %cst_33 {dimension_numbers = #tpu.dot_dimension_numbers<[1], [0], [0], [1], [0, 0, 1, 1], [], []>} : vector<8x8xbf16>, vector<8x8xbf16>, vector<8x8xf32> -> vector<8x8xf32>
    %93 = vector.extract_strided_slice %43 {offsets = [0, 24], sizes = [8, 8], strides = [1, 1]} : vector<8x32xbf16> to vector<8x8xbf16>
    %94 = vector.extract_strided_slice %44 {offsets = [0, 24], sizes = [8, 8], strides = [1, 1]} : vector<8x64xbf16> to vector<8x8xbf16>
    %95 = vector.extract_strided_slice %44 {offsets = [0, 56], sizes = [8, 8], strides = [1, 1]} : vector<8x64xbf16> to vector<8x8xbf16>
    %cst_34 = arith.constant dense<0.000000e+00> : vector<8x8xf32>
    %96 = tpu.matmul %93, %94, %cst_34 {dimension_numbers = #tpu.dot_dimension_numbers<[1], [1], [0], [0], [0, 0, 1, 0], [], []>} : vector<8x8xbf16>, vector<8x8xbf16>, vector<8x8xf32> -> vector<8x8xf32>
    %cst_35 = arith.constant dense<0xFF800000> : vector<8xf32>
    %97 = vector.multi_reduction <maximumf>, %96, %cst_35 [1] : vector<8x8xf32> to vector<8xf32>
    %98 = vector.shape_cast %97 : vector<8xf32> to vector<8x1xf32>
    %99 = vector.broadcast %98 : vector<8x1xf32> to vector<8x8xf32>
    %100 = arith.subf %96, %99 : vector<8x8xf32>
    %101 = math.exp %100 : vector<8x8xf32>
    %cst_36 = arith.constant dense<0.000000e+00> : vector<8xf32>
    %102 = vector.multi_reduction <add>, %101, %cst_36 [1] : vector<8x8xf32> to vector<8xf32>
    %103 = vector.shape_cast %102 : vector<8xf32> to vector<8x1xf32>
    %104 = tpu.reciprocal %103 {approx = true} : vector<8x1xf32> -> vector<8x1xf32>
    %105 = vector.broadcast %104 : vector<8x1xf32> to vector<8x8xf32>
    %106 = arith.mulf %101, %105 : vector<8x8xf32>
    %107 = arith.truncf %106 : vector<8x8xf32> to vector<8x8xbf16>
    %cst_37 = arith.constant dense<0.000000e+00> : vector<8x8xf32>
    %108 = tpu.matmul %107, %95, %cst_37 {dimension_numbers = #tpu.dot_dimension_numbers<[1], [0], [0], [1], [0, 0, 1, 1], [], []>} : vector<8x8xbf16>, vector<8x8xbf16>, vector<8x8xf32> -> vector<8x8xf32>
    %109 = tpu.concatenate %60, %76, %92, %108 in 1 : vector<8x8xf32>, vector<8x8xf32>, vector<8x8xf32>, vector<8x8xf32> -> vector<8x32xf32>
    %110 = arith.truncf %109 : vector<8x32xf32> to vector<8x32xbf16>
    %c0_38 = arith.constant 0 : index
    %c0_39 = arith.constant 0 : index
    %111 = vector.load %arg4[%c0_38, %c0_39] : memref<32x32xbf16, #tpu.memory_space<vmem>>, vector<32x32xbf16>
    %cst_40 = arith.constant dense<0.000000e+00> : vector<8x32xf32>
    %112 = tpu.matmul %110, %111, %cst_40 {dimension_numbers = #tpu.dot_dimension_numbers<[1], [0], [0], [1], [0, 0, 1, 1], [], []>} : vector<8x32xbf16>, vector<32x32xbf16>, vector<8x32xf32> -> vector<8x32xf32>
    %113 = vector.broadcast %6 : vector<1x32xf32> to vector<8x32xf32>
    %114 = arith.addf %112, %113 : vector<8x32xf32>
    %115 = arith.addf %114, %37 : vector<8x32xf32>
    %cst_41 = arith.constant dense<0.000000e+00> : vector<8xf32>
    %116 = vector.multi_reduction <add>, %115, %cst_41 [1] : vector<8x32xf32> to vector<8xf32>
    %117 = vector.shape_cast %116 : vector<8xf32> to vector<8x1xf32>
    %cst_42 = arith.constant 3.200000e+01 : f32
    %118 = vector.broadcast %cst_42 : f32 to vector<8x1xf32>
    %119 = arith.divf %117, %118 : vector<8x1xf32>
    %120 = vector.broadcast %119 : vector<8x1xf32> to vector<8x32xf32>
    %121 = arith.subf %115, %120 : vector<8x32xf32>
    %122 = arith.mulf %121, %121 : vector<8x32xf32>
    %cst_43 = arith.constant dense<0.000000e+00> : vector<8xf32>
    %123 = vector.multi_reduction <add>, %122, %cst_43 [1] : vector<8x32xf32> to vector<8xf32>
    %124 = vector.shape_cast %123 : vector<8xf32> to vector<8x1xf32>
    %cst_44 = arith.constant 3.200000e+01 : f32
    %125 = vector.broadcast %cst_44 : f32 to vector<8x1xf32>
    %126 = arith.divf %124, %125 : vector<8x1xf32>
    %127 = vector.broadcast %119 : vector<8x1xf32> to vector<8x32xf32>
    %128 = arith.subf %115, %127 : vector<8x32xf32>
    %cst_45 = arith.constant 9.99999974E-6 : f32
    %129 = vector.broadcast %cst_45 : f32 to vector<8x1xf32>
    %130 = arith.addf %126, %129 : vector<8x1xf32>
    %131 = math.rsqrt %130 : vector<8x1xf32>
    %132 = vector.broadcast %131 : vector<8x1xf32> to vector<8x32xf32>
    %133 = arith.mulf %128, %132 : vector<8x32xf32>
    %134 = vector.broadcast %7 : vector<1x32xf32> to vector<8x32xf32>
    %135 = arith.mulf %133, %134 : vector<8x32xf32>
    %136 = vector.broadcast %8 : vector<1x32xf32> to vector<8x32xf32>
    %137 = arith.addf %135, %136 : vector<8x32xf32>
    %138 = arith.truncf %137 : vector<8x32xf32> to vector<8x32xbf16>
    %c0_46 = arith.constant 0 : index
    %c0_47 = arith.constant 0 : index
    %139 = vector.load %arg5[%c0_46, %c0_47] : memref<32x128xbf16, #tpu.memory_space<vmem>>, vector<32x128xbf16>
    %cst_48 = arith.constant dense<0.000000e+00> : vector<8x128xf32>
    %140 = tpu.matmul %138, %139, %cst_48 {dimension_numbers = #tpu.dot_dimension_numbers<[1], [0], [0], [1], [0, 0, 1, 1], [], []>} : vector<8x32xbf16>, vector<32x128xbf16>, vector<8x128xf32> -> vector<8x128xf32>
    %141 = vector.broadcast %9 : vector<1x128xf32> to vector<8x128xf32>
    %142 = arith.addf %140, %141 : vector<8x128xf32>
    %143 = arith.mulf %142, %142 : vector<8x128xf32>
    %144 = arith.mulf %142, %143 : vector<8x128xf32>
    %cst_49 = arith.constant 4.471500e-02 : f32
    %145 = vector.broadcast %cst_49 : f32 to vector<8x128xf32>
    %146 = arith.mulf %145, %144 : vector<8x128xf32>
    %147 = arith.addf %142, %146 : vector<8x128xf32>
    %cst_50 = arith.constant 0.797884583 : f32
    %148 = vector.broadcast %cst_50 : f32 to vector<8x128xf32>
    %149 = arith.mulf %148, %147 : vector<8x128xf32>
    %150 = math.tanh %149 : vector<8x128xf32>
    %cst_51 = arith.constant 1.000000e+00 : f32
    %151 = vector.broadcast %cst_51 : f32 to vector<8x128xf32>
    %152 = arith.addf %151, %150 : vector<8x128xf32>
    %cst_52 = arith.constant 5.000000e-01 : f32
    %153 = vector.broadcast %cst_52 : f32 to vector<8x128xf32>
    %154 = arith.mulf %153, %152 : vector<8x128xf32>
    %155 = arith.mulf %142, %154 : vector<8x128xf32>
    %156 = arith.truncf %155 : vector<8x128xf32> to vector<8x128xbf16>
    %c0_53 = arith.constant 0 : index
    %c0_54 = arith.constant 0 : index
    %157 = vector.load %arg6[%c0_53, %c0_54] : memref<128x32xbf16, #tpu.memory_space<vmem>>, vector<128x32xbf16>
    %cst_55 = arith.constant dense<0.000000e+00> : vector<8x32xf32>
    %158 = tpu.matmul %156, %157, %cst_55 {dimension_numbers = #tpu.dot_dimension_numbers<[1], [0], [0], [1], [0, 0, 1, 1], [], []>} : vector<8x128xbf16>, vector<128x32xbf16>, vector<8x32xf32> -> vector<8x32xf32>
    %159 = vector.broadcast %10 : vector<1x32xf32> to vector<8x32xf32>
    %160 = arith.addf %158, %159 : vector<8x32xf32>
    %161 = arith.addf %115, %160 : vector<8x32xf32>
    %c0_56 = arith.constant 0 : index
    %c0_57 = arith.constant 0 : index
    %c0_58 = arith.constant 0 : index
    %162 = vector.load %arg8[%c0_56, %c0_57, %c0_58] : memref<1x8x32xf32, #tpu.memory_space<vmem>>, vector<1x8x32xf32>
    %163 = vector.shape_cast %162 : vector<1x8x32xf32> to vector<8x32xf32>
    %164 = vector.shape_cast %161 : vector<8x32xf32> to vector<1x8x32xf32>
    tpu.vector_store %arg8[%c0_56, %c0_57, %c0_58], %164 {strides = array<i32>} : memref<1x8x32xf32, #tpu.memory_space<vmem>>, vector<1x8x32xf32>,
    return
  }
  func.func @transform_0(%arg0: i32) -> (i32, i32, i32) {
    %c0_i32 = arith.constant 0 : i32
    %c0_i32_0 = arith.constant 0 : i32
    %c0_i32_1 = arith.constant 0 : i32
    return %arg0, %c0_i32, %c0_i32_0 : i32, i32, i32
  }
  func.func @transform_1(%arg0: i32) -> (i32, i32) {
    %c0_i32 = arith.constant 0 : i32
    %c0_i32_0 = arith.constant 0 : i32
    %c0_i32_1 = arith.constant 0 : i32
    return %c0_i32, %c0_i32_0 : i32, i32
  }
  func.func @transform_2(%arg0: i32) -> (i32, i32) {
    %c0_i32 = arith.constant 0 : i32
    %c0_i32_0 = arith.constant 0 : i32
    %c0_i32_1 = arith.constant 0 : i32
    return %c0_i32, %c0_i32_0 : i32, i32
  }
  func.func @transform_3(%arg0: i32) -> (i32, i32) {
    %c0_i32 = arith.constant 0 : i32
    %c0_i32_0 = arith.constant 0 : i32
    %c0_i32_1 = arith.constant 0 : i32
    return %c0_i32, %c0_i32_0 : i32, i32
  }
  func.func @transform_4(%arg0: i32) -> (i32, i32) {
    %c0_i32 = arith.constant 0 : i32
    %c0_i32_0 = arith.constant 0 : i32
    %c0_i32_1 = arith.constant 0 : i32
    return %c0_i32, %c0_i32_0 : i32, i32
  }
  func.func @transform_5(%arg0: i32) -> (i32, i32) {
    %c0_i32 = arith.constant 0 : i32
    %c0_i32_0 = arith.constant 0 : i32
    %c0_i32_1 = arith.constant 0 : i32
    return %c0_i32, %c0_i32_0 : i32, i32
  }
  func.func @transform_6(%arg0: i32) -> (i32, i32) {
    %c0_i32 = arith.constant 0 : i32
    %c0_i32_0 = arith.constant 0 : i32
    %c0_i32_1 = arith.constant 0 : i32
    return %c0_i32, %c0_i32_0 : i32, i32
  }
  func.func @transform_7(%arg0: i32) -> (i32, i32, i32) {
    %c0_i32 = arith.constant 0 : i32
    %c0_i32_0 = arith.constant 0 : i32
    %c0_i32_1 = arith.constant 0 : i32
    return %arg0, %c0_i32, %c0_i32_0 : i32, i32, i32
  }
}

</mosaic_0001>

<bundles_post_ra>
// kernel: tpu_custom_call.1
= control target key start
LH: loop header
LB: loop body
LE: loop exit
PB: predicated region body
PF: predicated region fallthrough
CT: control target
= control target key end

     0   :  { %12 = vsyncpa [#allocation3], 0  ;;  %s1481_s0 = inlined_call_operand.vmem [shape: f32[2,8,32], index: 0, kind: input, shape index: {}]   ;;  %s1482_s1 = inlined_call_operand.vmem [shape: bf16[32,32], index: 1, kind: input, shape index: {}]   ;;  %s1483_s2 = inlined_call_operand.vmem [shape: bf16[32,64], index: 2, kind: input, shape index: {}]   ;;  %s1484_s3 = inlined_call_operand.vmem [shape: bf16[32,32], index: 3, kind: input, shape index: {}]   ;;  %s1485_s4 = inlined_call_operand.vmem [shape: bf16[32,128], index: 4, kind: input, shape index: {}]   ;;  %s1486_s5 = inlined_call_operand.vmem [shape: bf16[128,32], index: 5, kind: input, shape index: {}]   ;;  %s1487_s6 = inlined_call_operand.hbm [shape: f32[9,128], index: 6, kind: input, shape index: {}]   ;;  %s1488_s7 = inlined_call_operand.hbm [shape: f32[2,8,32], index: 7, kind: output, shape index: {}]  }
   0x1   :  { %13 = vsyncpa [#allocation4], 0 }
   0x2   :  { %15 = vsyncpa [#allocation4 + $0x1], 0  ;;  %s1275_s24 = smov 0   ;;  %s1277_s25 = smov 0  }
   0x3   :  { %s1279_s26 = smov 0   ;;  %s1281_s27 = smov 0  }
   0x4 LB: > { %s1296_s28 = sadd.s32 4294967295, %s1219_s27   ;;  %s923_s29 = sadd.s32 4294967294, %s1219_s27   ;;  %s1219_s27 = sphi %s1281_s27, %s1494_s27   ;;  %s1215_s26 = sphi %s1279_s26, %s1493_s26   ;;  %s1211_s25 = sphi %s1277_s25, %s1492_s25   ;;  %s1207_s24 = sphi %s1275_s24, %s1491_s24  }
   0x5   : > { %s1300_s30 = sadd.s32 1, %s1219_s27   ;;  %s180_s8 = sadd.s32 1, %s1215_s26 }
   0x6   : > { %s177_s9 = ssub.s32 %s1219_s27, %s1300_s30  ;;  %p190_p0 = scmp.ne.s32.totalorder %s1215_s26, %s1211_s25 }
   0x7   : > { %p178_p1 = scmp.eq.s32.totalorder %s177_s9, 0  ;;  %p191_p2 = scmp.eq.s32.totalorder %s1296_s28, 1 }
   0x8   : > { %p196_p3 = scmp.ne.s32.totalorder %s1211_s25, %s1207_s24  ;;  %p197_p4 = scmp.eq.s32.totalorder %s923_s29, 1 }
   0x9   : > { %s1311_s10 = scalar_select %p178_p1, %s1215_s26, %s180_s8  }
   0xa   : > { %p1313_p5 = por %p191_p2, %p190_p0  ;;  %p1317_p6 = por %p197_p4, %p196_p3 }
   0xb   : > { %p924_p7 = scmp.ge.s32.totalorder %s1219_s27, 1  ;;  %p204_p8 = scmp.lt.s32.totalorder %s1219_s27, 3 }
   0xc   : > { %p1041_p9 = scmp.eq.s32.totalorder %s1296_s28, 0  ;;  %s230_s15 = sshll.u32 %s1487_s6, 4  ;;  %s231_s15 = int_to_ptr.hbm [resolvable:$true] %s230_s15 }
   0xd   : > { %p205_p10 = pnand %p924_p7, %p204_p8  ;;  %s1221_s16 = smov [#allocation2]  }
   0xe   : > { %s232_s17 = sshll.u32 %s1221_s16, 4  ;;  %s1222_s18 = smov 128   ;;  %s233_s17 = int_to_ptr.vmem [resolvable:$true] %s232_s17 }
   0xf   : > { %p1033_p11 = pneg %p205_p10  ;;  %s1223_s19 = smov 8  }
  0x10   : > { %255 = sbr.rel (%p205_p10) target bundleno = 1897 (0x769), region = 48 }
  0x11   : > { %p1034_p12 = pnand %p1041_p9, %p1033_p11 }
  0x13   : > { %1036 = dma.hbm_to_vmem [thread:$0]  (!%p1034_p12), %s231_s15, 256, %s233_s17, [#allocation3], %s1222_s18, %s1222_s18, %s1223_s19  }
  0x15   : > { %1198 = dma.done.wait (%p1041_p9), [#allocation3], 256  }
  0x16   : > { %1200 = vsyncadd (%p1041_p9), [#allocation3], 4294967040  ;;  %p287_p13 = scmp.lt.s32.totalorder %s1296_s28, 1  ;;  %vm302_vm0 = vcmask 261120   ;;  %v1224_v2 = vmov 32.0   ;;  %v1014_v3 = vld [vmem:[%s1483_s2 + $0x8] sm:$0xff] }
  0x17   : > { %1099 = vrcp.f32 %v1224_v2  ;;  %397 = vmatpush.bf16.msra.mxu1 %v1014_v3  ;;  %v1013_v4 = vld [vmem:[%s1483_s2] sm:$0xff]  ;;  %v1012_v17 = vld [vmem:[%s1482_s1 + $0x8] sm:$0xff]  ;;  %vm406_vm2 = vcmask 64512   ;;  %s1225_s19 = smov 120   ;;  %s1228_s22 = smov 88   ;;  %vm446_vm6 = vcmask 1043456  }
  0x18   : > { %s288_s20 = scalar_select %p287_p13, %s1296_s28, 1  ;;  %363 = vmatpush.bf16.msra.mxu0 %v1012_v17  ;;  %v1011_v18 = vld [vmem:[%s1482_s1] sm:$0xff]  ;;  %vm647_vm7 = vcmask 130048   ;;  %vm649_vm8 = vcmask 195584  }
  0x19   : > { %v1092_v19 = vld [vmem:[#allocation2 + $0x3] ss:$0 sm:$0xff]  ;;  %v1090_v36 = vld [vmem:[#allocation2] ss:$0 sm:$0xff]  ;;  %v1091_v39 = vld [vmem:[#allocation2 + $0x1] ss:$0 sm:$0xff] }
  0x1a   : > { %s930_s21 = sshll.u32 %s288_s20, 3  ;;  %s1226_s20 = smov 112   ;;  %v1093_v49 = vld [vmem:[#allocation2 + $0x2] ss:$0 sm:$0xff] }
  0x1b   : > { %s290_s29 = scalar_lea.vmem %s1481_s0, %s930_s21  ;;  %398 = vmatpush.bf16.msra.mxu1 %v1013_v4  ;;  %s1227_s21 = smov 104  }
  0x1c   : > { %v292_v0 = vld [vmem:[%s290_s29] sm:$0xff]  ;;  %364 = vmatpush.bf16.msra.mxu0 %v1011_v18  ;;  %s1229_s23 = smov 96   ;;  %s1230_s29 = smov 80  }
  0x1d   : > { %v303_v1 = vsel %vm302_vm0, %v292_v0, 0.0  ;;  %v1100_v5 = vpop.eup %1099  ;;  %v370_v6 = vpack.c.bf16 %v292_v0, %v292_v0  ;;  %s1231_s8 = smov 72   ;;  %s1232_s9 = smov 16  }
  0x1e   : > { %304 = vadd.xlane.f32.xlu0 %v303_v1  ;;  %v307_v7 = vmul.f32 32.0, %v1100_v5  ;;  %vm311_vm1 = vweird.f32 %v1100_v5  ;;  %s1233_s13 = smov 8   ;;  %s1234_s14 = smov 24  }
  0x1f   : > { %948 = vmatmul.msk.bf16.vlgmr.msra.gmra.mxu1 %vm302_vm0, %v370_v6 }
  0x20   : > { %v308_v8 = vsub.f32 1.0, %v307_v7 }
  0x22   : > { %v309_v9 = vmul.f32 %v1100_v5, %v308_v8 }
  0x24   : > { %v310_v10 = vadd.f32 %v1100_v5, %v309_v9 }
  0x26   : > { %v1346_v11 = vsel %vm311_vm1, %v1100_v5, %v310_v10 }
  0x91   : > { %v305_v12 = vpop.xlane.xlu0 %304 }
  0x92   : > { %v313_v13 = vmul.f32 %v1346_v11, %v305_v12 }
  0x94   : > { %v314_v14 = vsub.f32 %v292_v0, %v313_v13 }
  0x96   : > { %v315_v15 = vmul.f32 %v314_v14, %v314_v14 }
  0x98   : > { %v316_v16 = vsel %vm302_vm0, %v315_v15, 0.0 }
  0x99   : > { %317 = vadd.xlane.f32.xlu0 %v316_v16 }
  0x9c   : > { %v400_v20 = vpop.f32.mrf.mxu1 }
  0x9d   : > { %v401_v23 = vadd.f32 %v1092_v19, %v400_v20 }
  0x9f   : > { %v405_v25 = vpack.c.bf16 %v401_v23, %v401_v23 }
  0xa1   : > { %v439_v26 = vunpack.c.l.b16 %v405_v25  ;;  %v411_v27 = vsel %vm406_vm2, %v405_v25, 0 }
  0xa2   : > { %420 = vmatpush.bf16.xpose.msra.mxu2 %v411_v27 }
  0xa3   : > { %v1358_v28 = vpack.c.b16 %v439_v26, %v439_v26 }
  0xa4   : > { %v402_v29 = vpop.f32.mrf.mxu1 }
  0xa5   : > { %468 = vrot.lane.b32.xlu1 %v1358_v28, %s1225_s19  ;;  %524 = vrot.lane.b32.xlu2 %v1358_v28, %s1226_s20 }
  0xad   : > { %580 = vrot.lane.b32.xlu2 %v1358_v28, %s1227_s21 }
  0xff   : > { %v525_v43 = vpop.permute.xlu2 %524 }
 0x100   : > { %v530_v46 = vsel %vm406_vm2, %v525_v43, 0 }
 0x101   : > { %539 = vmatpush.bf16.xpose.msrb.mxu1 %v530_v46 }
 0x107   : > { %v581_v47 = vpop.permute.xlu2 %580 }
 0x108   : > { %v586_v48 = vsel %vm406_vm2, %v581_v47, 0 }
 0x10c   : > { %v318_v21 = vpop.xlane.xlu0 %317 }
 0x10d   : > { %v319_v22 = vmul.f32 %v318_v21, %v1346_v11 }
 0x10f   : > { %v320_v24 = vadd.f32 1e-05, %v319_v22 }
 0x111   : > { %1101 = vrsqrt.f32 %v320_v24  ;;  %vm327_vm4 = vweird.f32 %v320_v24 }
 0x117   : > { %v1102_v30 = vpop.eup %1101  ;;  %v469_v44 = vpop.permute.xlu1 %468 }
 0x118   : > { %v322_v31 = vmul.f32 %v1102_v30, %v320_v24  ;;  %vm328_vm3 = vweird.f32 %v1102_v30  ;;  %v474_v45 = vsel %vm406_vm2, %v469_v44, 0 }
 0x119   : > { %vm329_vm5 = vmor %vm327_vm4, %vm328_vm3  ;;  %483 = vmatpush.bf16.xpose.msra.mxu3 %v474_v45 }
 0x11a   : > { %v323_v32 = vmul.f32 %v1102_v30, %v322_v31 }
 0x11c   : > { %v324_v33 = vmul.f32 0.5, %v323_v32 }
 0x11e   : > { %v325_v34 = vsub.f32 1.5, %v324_v33 }
 0x120   : > { %v326_v35 = vmul.f32 %v1102_v30, %v325_v34 }
 0x121   : > { %595 = vmatpush.bf16.xpose.msrb.mxu3 %v586_v48 }
 0x122   : > { %v330_v37 = vsel %vm329_vm5, %v1102_v30, %v326_v35 }
 0x123   : > { %v331_v38 = vmul.f32 %v330_v37, %v314_v14 }
 0x125   : > { %v333_v40 = vmul.f32 %v1090_v36, %v331_v38 }
 0x127   : > { %v335_v41 = vadd.f32 %v1091_v39, %v333_v40 }
 0x129   : > { %v336_v42 = vpack.c.bf16 %v335_v41, %v335_v41 }
 0x12b   : > { %939 = vmatmul.msk.bf16.vlgmr.msra.gmra.mxu0 %vm302_vm0, %v336_v42 }
 0x1a8   : > { %v366_v50 = vpop.f32.mrf.mxu0 }
 0x1a9   : > { %v1369_v51 = vadd.f32 %v1093_v49, %v366_v50 }
 0x1ab   : > { %v404_v52 = vpack.c.bf16 %v1369_v51, %v1369_v51 }
 0x1ad   : > { %949 = vmatmul.msk.bf16.vlgmr.msra.gmra.mxu2 %vm406_vm2, %v404_v52  ;;  %v464_v53 = vunpack.c.l.b16 %v404_v52 }
 0x1af   : > { %v465_v54 = vpack.c.b16 %v464_v53, %v464_v53 }
 0x1b0   : > { %v368_v55 = vpop.f32.mrf.mxu0 }
 0x1b1   : > { %522 = vrot.lane.b32.xlu0 %v465_v54, %s1226_s20  ;;  %466 = vrot.lane.b32.xlu1 %v465_v54, %s1225_s19 }
 0x1b9   : > { %578 = vrot.lane.b32.xlu1 %v465_v54, %s1227_s21 }
 0x223   : > { %v523_v56 = vpop.permute.xlu0 %522  ;;  %v467_v57 = vpop.permute.xlu1 %466 }
 0x224   : > { %951 = vmatmul.msk.bf16.vlgmr.msra.gmra.mxu3 %vm406_vm2, %v467_v57  ;;  %953 = vmatmul.msk.bf16.vlgmr.msrb.gmra.mxu1 %vm406_vm2, %v523_v56 }
 0x22b   : > { %v579_v60 = vpop.permute.xlu1 %578 }
 0x230   : > { %v422_v58 = vpop.f32.mrf.mxu2 }
 0x231   : > { %v426_v59 = vsel %vm406_vm2, %v422_v58, -inf }
 0x232   : > { %427 = vmax.xlane.f32.xlu2 %v426_v59 }
 0x234   : > { %955 = vmatmul.msk.bf16.vlgmr.msrb.gmra.mxu3 %vm406_vm2, %v579_v60 }
 0x238   : > { %v424_v61 = vpop.f32.mrf.mxu2 }
 0x239   : > { %v1016_v61 = vld [vmem:[%s1484_s3 + $0x8] sm:$0xff] }
 0x23a   : > { %678 = vmatpush.bf16.msra.mxu1 %v1016_v61 }
 0x2a1   : > { %v541_v62 = vpop.f32.mrf.mxu1 }
 0x2a2   : > { %v545_v63 = vsel %vm406_vm2, %v541_v62, -inf }
 0x2a3   : > { %546 = vmax.xlane.f32.xlu0 %v545_v63 }
 0x2a5   : > { %v428_v0 = vpop.xlane.xlu2 %427 }
 0x2a6   : > { %v429_v1 = vsub.f32 %v422_v58, %v428_v0 }
 0x2a7   : > { %v485_v2 = vpop.f32.mrf.mxu3 }
 0x2a8   : > { %v430_v3 = vmul.f32 1.442695, %v429_v1  ;;  %v489_v4 = vsel %vm406_vm2, %v485_v2, -inf }
 0x2a9   : > { %v543_v5 = vpop.f32.mrf.mxu1  ;;  %490 = vmax.xlane.f32.xlu1 %v489_v4 }
 0x2aa   : > { %1103 = vpow2.f32 %v430_v3 }
 0x2af   : > { %v487_v6 = vpop.f32.mrf.mxu3 }
 0x2b0   : > { %v1104_v7 = vpop.eup %1103  ;;  %v1094_v6 = vld [vmem:[#allocation2 + $0x4] ss:$0 sm:$0xff] }
 0x2b1   : > { %v432_v8 = vsel %vm406_vm2, %v1104_v7, 0.0 }
 0x2b2   : > { %433 = vadd.xlane.f32.xlu2 %v432_v8 }
 0x2b7   : > { %501 = vrot.lane.b32.xlu0 %v1358_v28, %s1228_s22  ;;  %v597_v9 = vpop.f32.mrf.mxu3 }
 0x2b8   : > { %v601_v10 = vsel %vm406_vm2, %v597_v9, -inf }
 0x2ba   : > { %602 = vmax.xlane.f32.xlu2 %v601_v10 }
 0x2bf   : > { %v599_v12 = vpop.f32.mrf.mxu3 }
 0x2c2   : > { %441 = vrot.lane.b32.xlu1 %v1358_v28, %s1229_s23 }
 0x2ca   : > { %557 = vrot.lane.b32.xlu1 %v1358_v28, %s1230_s29  ;;  %s1173_s29 = scalar_lea.hbm %s1488_s7, 16 }
 0x316   : > { %v547_v13 = vpop.xlane.xlu0 %546 }
 0x317   : > { %v548_v14 = vsub.f32 %v541_v62, %v547_v13  ;;  %v1015_v62 = vld [vmem:[%s1484_s3] sm:$0xff] }
 0x318   : > { %679 = vmatpush.bf16.msra.mxu1 %v1015_v62 }
 0x319   : > { %v549_v15 = vmul.f32 1.442695, %v548_v14 }
 0x31b   : > { %1105 = vpow2.f32 %v549_v15 }
 0x31c   : > { %v491_v16 = vpop.xlane.xlu1 %490 }
 0x31d   : > { %v492_v17 = vsub.f32 %v485_v2, %v491_v16 }
 0x31f   : > { %v493_v18 = vmul.f32 1.442695, %v492_v17 }
 0x321   : > { %v1106_v19 = vpop.eup %1105  ;;  %1107 = vpow2.f32 %v493_v18  ;;  %v1018_v18 = vld [vmem:[%s1485_s4 + $0x8] sm:$0xff] }
 0x322   : > { %v551_v20 = vsel %vm406_vm2, %v1106_v19, 0.0 }
 0x323   : > { %552 = vadd.xlane.f32.xlu2 %v551_v20 }
 0x325   : > { %v434_v21 = vpop.xlane.xlu2 %433 }
 0x326   : > { %1109 = vrcp.f32 %v434_v21 }
 0x327   : > { %v1108_v22 = vpop.eup %1107 }
 0x328   : > { %v495_v23 = vsel %vm406_vm2, %v1108_v22, 0.0 }
 0x329   : > { %v502_v30 = vpop.permute.xlu0 %501 }
 0x32a   : > { %v507_v33 = vsel %vm446_vm6, %v502_v30, 0  ;;  %v1095_v30 = vld [vmem:[#allocation2 + $0x5] ss:$0 sm:$0xff] }
 0x32b   : > { %496 = vadd.xlane.f32.xlu2 %v495_v23 }
 0x32c   : > { %v1110_v26 = vpop.eup %1109 }
 0x32d   : > { %v603_v24 = vpop.xlane.xlu2 %602  ;;  %v436_v29 = vmul.f32 %v1110_v26, %v1104_v7 }
 0x32e   : > { %v604_v25 = vsub.f32 %v597_v9, %v603_v24 }
 0x32f   : > { %v437_v34 = vpack.c.bf16 %v436_v29, %v436_v29 }
 0x330   : > { %v605_v27 = vmul.f32 1.442695, %v604_v25 }
 0x332   : > { %1111 = vpow2.f32 %v605_v27 }
 0x334   : > { %v442_v31 = vpop.permute.xlu1 %441 }
 0x335   : > { %v448_v32 = vsel %vm446_vm6, %v442_v31, 0 }
 0x336   : > { %457 = vmatpush.bf16.msrb.mxu0 %v448_v32 }
 0x338   : > { %v1112_v35 = vpop.eup %1111 }
 0x339   : > { %950 = vmatmul.msk.bf16.vlgmr.msrb.gmra.mxu0 %vm406_vm2, %v437_v34  ;;  %v607_v36 = vsel %vm406_vm2, %v1112_v35, 0.0 }
 0x33a   : > { %516 = vmatpush.bf16.msra.mxu0 %v507_v33  ;;  %608 = vadd.xlane.f32.xlu2 %v607_v36  ;;  %v1096_v33 = vld [vmem:[#allocation2 + $0x6] ss:$0 sm:$0xff] }
 0x33c   : > { %v558_v37 = vpop.permute.xlu1 %557 }
 0x33d   : > { %v563_v38 = vsel %vm446_vm6, %v558_v37, 0  ;;  %v1024_v37 = vld [vmem:[%s1486_s5 + $0x28] sm:$0xff] }
 0x33e   : > { %572 = vmatpush.bf16.msrb.mxu2 %v563_v38  ;;  %v1023_v38 = vld [vmem:[%s1486_s5 + $0x20] sm:$0xff] }
 0x342   : > { %739 = vmatpush.bf16.msra.mxu2 %v1018_v18 }
 0x352   : > { %613 = vrot.lane.b32.xlu2 %v1358_v28, %s1231_s8  ;;  %s284_s8 = sand.u32 1, %s1211_s25  }
 0x353   : > { %s837_s20 = scalar_lea.sflag [#allocation4], %s284_s8 }
 0x396   : > { %v553_v39 = vpop.xlane.xlu2 %552 }
 0x397   : > { %1113 = vrcp.f32 %v553_v39  ;;  %v1022_v39 = vld [vmem:[%s1486_s5 + $0x18] sm:$0xff] }
 0x39d   : > { %v1114_v40 = vpop.eup %1113 }
 0x39e   : > { %v555_v41 = vmul.f32 %v1114_v40, %v1106_v19  ;;  %v497_v42 = vpop.xlane.xlu2 %496  ;;  %v1026_v19 = vld [vmem:[%s1486_s5 + $0x38] sm:$0xff]  ;;  %v1021_v40 = vld [vmem:[%s1486_s5 + $0x10] sm:$0xff] }
 0x39f   : > { %1115 = vrcp.f32 %v497_v42  ;;  %821 = vmatpush.bf16.msra.mxu3 %v1026_v19  ;;  %v1019_v42 = vld [vmem:[%s1486_s5] sm:$0xff] }
 0x3a0   : > { %v556_v43 = vpack.c.bf16 %v555_v41, %v555_v41  ;;  %v1020_v41 = vld [vmem:[%s1486_s5 + $0x8] sm:$0xff] }
 0x3a2   : > { %954 = vmatmul.msk.bf16.vlgmr.msrb.gmra.mxu2 %vm406_vm2, %v556_v43  ;;  %v1097_v43 = vld [vmem:[#allocation2 + $0x7] ss:$0 sm:$0xff] }
 0x3a5   : > { %v1116_v44 = vpop.eup %1115 }
 0x3a6   : > { %v499_v45 = vmul.f32 %v1116_v44, %v1108_v22 }
 0x3a8   : > { %v500_v46 = vpack.c.bf16 %v499_v45, %v499_v45 }
 0x3aa   : > { %952 = vmatmul.msk.bf16.vlgmr.msra.gmra.mxu0 %vm406_vm2, %v500_v46 }
 0x3ad   : > { %v609_v47 = vpop.xlane.xlu2 %608 }
 0x3ae   : > { %1117 = vrcp.f32 %v609_v47 }
 0x3b4   : > { %v1118_v48 = vpop.eup %1117 }
 0x3b5   : > { %v611_v49 = vmul.f32 %v1118_v48, %v1112_v35  ;;  %v614_v50 = vpop.permute.xlu2 %613 }
 0x3b6   : > { %v619_v28 = vsel %vm446_vm6, %v614_v50, 0  ;;  %v459_v52 = vpop.f32.mrf.mxu0 }
 0x3b7   : > { %v612_v53 = vpack.c.bf16 %v611_v49, %v611_v49  ;;  %628 = vmatpush.bf16.msrb.mxu0 %v619_v28 }
 0x3ba   : > { %956 = vmatmul.msk.bf16.vlgmr.msrb.gmra.mxu0 %vm406_vm2, %v612_v53 }
 0x3be   : > { %v461_v54 = vpop.f32.mrf.mxu0 }
 0x425   : > { %v574_v55 = vpop.f32.mrf.mxu2 }
 0x426   : > { %639 = vrot.lane.b32.xlu1 %v574_v55, %s1232_s9  ;;  %s929_s9 = sshll.u32 %s284_s8, 3 }
 0x427   : > { %v518_v56 = vpop.f32.mrf.mxu0  ;;  %s286_s17 = scalar_lea.vmem [#allocation5], %s929_s9 }
 0x428   : > { %635 = vrot.lane.b32.xlu0 %v518_v56, %s1233_s13  ;;  %s1008_s13 = sshll.u32 %s1296_s28, 3  ;;  %s849_s18 = sshll.u32 %s286_s17, 4  ;;  %s850_s18 = int_to_ptr.vmem [resolvable:$true] %s849_s18 }
 0x429   : > { %s847_s16 = scalar_lea.hbm %s1488_s7, %s1008_s13 }
 0x42a   : > { %s851_s19 = sshll.u32 %s847_s16, 4  ;;  %s852_s19 = int_to_ptr.hbm [resolvable:$true] %s851_s19 }
 0x42b   : > { %s1167_s21 = sshra.s32 %s852_s19, 4  ;;  %s1168_s21 = int_to_ptr.hbm [resolvable:$true] %s1167_s21 }
 0x42c   : > { %s1169_s28 = scalar_lea.hbm %s1168_s21, 8  ;;  %p1174_p3 = scmp.lt.s32.totalorder %s1168_s21, %s1488_s7 }
 0x42d   : > { %v576_v57 = vpop.f32.mrf.mxu2  ;;  %p1170_p0 = scmp.ne.s32.totalorder %s1168_s21, %s1169_s28  ;;  %p1175_p4 = scmp.lt.s32.totalorder %s1173_s29, %s1169_s28 }
 0x42e   : > { %v1098_v57 = vld [vmem:[#allocation2 + $0x8] ss:$0 sm:$0xff] }
 0x42f   : > { %v520_v58 = vpop.f32.mrf.mxu0  ;;  %p1171_p1 = pnand %p1170_p0, %p1313_p5  ;;  %p1176_p7 = por %p1175_p4, %p1174_p3 }
 0x431   : > { %p1172_p2 = pneg %p1171_p1 }
 0x433   : > { %p1177_p8 = pnand %p1176_p7, %p1172_p2 }
 0x437   : > { %v630_v59 = vpop.f32.mrf.mxu0 }
 0x438   : > { %643 = vrot.lane.b32.xlu0 %v630_v59, %s1234_s14 }
 0x43f   : > { %v632_v60 = vpop.f32.mrf.mxu0 }
 0x498   : > { %v640_v1 = vpop.permute.xlu1 %639 }
 0x49a   : > { %v636_v63 = vpop.permute.xlu0 %635 }
 0x49b   : > { %v646_v0 = vsel %vm406_vm2, %v459_v52, %v636_v63 }
 0x49c   : > { %v648_v3 = vsel %vm647_vm7, %v646_v0, %v640_v1 }
 0x4aa   : > { %v644_v2 = vpop.permute.xlu0 %643 }
 0x4ab   : > { %v650_v4 = vsel %vm649_vm8, %v648_v3, %v644_v2 }
 0x4ac   : > { %v651_v5 = vpack.c.bf16 %v650_v4, %v650_v4 }
 0x4ae   : > { %965 = vmatmul.msk.bf16.vlgmr.msra.gmra.mxu1 %vm302_vm0, %v651_v5 }
 0x52b   : > { %v681_v7 = vpop.f32.mrf.mxu1 }
 0x52c   : > { %v682_v8 = vadd.f32 %v1094_v6, %v681_v7 }
 0x52e   : > { %v1408_v9 = vadd.f32 %v682_v8, %v1369_v51  ;;  %v1017_v51 = vld [vmem:[%s1485_s4] sm:$0xff] }
 0x52f   : > { %740 = vmatpush.bf16.msra.mxu2 %v1017_v51 }
 0x530   : > { %v686_v10 = vsel %vm302_vm0, %v1408_v9, 0.0 }
 0x531   : > { %687 = vadd.xlane.f32.xlu1 %v686_v10 }
 0x533   : > { %v683_v12 = vpop.f32.mrf.mxu1 }
 0x5a4   : > { %v688_v13 = vpop.xlane.xlu1 %687 }
 0x5a5   : > { %v689_v14 = vmul.f32 %v688_v13, %v1346_v11 }
 0x5a7   : > { %v690_v15 = vsub.f32 %v1408_v9, %v689_v14 }
 0x5a9   : > { %v691_v16 = vmul.f32 %v690_v15, %v690_v15 }
 0x5ab   : > { %v692_v17 = vsel %vm302_vm0, %v691_v16, 0.0 }
 0x5ac   : > { %693 = vadd.xlane.f32.xlu0 %v692_v17 }
 0x61f   : > { %v694_v20 = vpop.xlane.xlu0 %693 }
 0x620   : > { %v695_v21 = vmul.f32 %v694_v20, %v1346_v11  ;;  %v1025_v11 = vld [vmem:[%s1486_s5 + $0x30] sm:$0xff] }
 0x621   : > { %822 = vmatpush.bf16.msra.mxu3 %v1025_v11 }
 0x622   : > { %v696_v22 = vadd.f32 1e-05, %v695_v21 }
 0x624   : > { %1119 = vrsqrt.f32 %v696_v22  ;;  %vm703_vm10 = vweird.f32 %v696_v22 }
 0x625   : > { %823 = vmatpush.bf16.msra.mxu3 %v1024_v37 }
 0x629   : > { %824 = vmatpush.bf16.msra.mxu3 %v1023_v38 }
 0x62a   : > { %v1120_v23 = vpop.eup %1119 }
 0x62b   : > { %v698_v24 = vmul.f32 %v1120_v23, %v696_v22  ;;  %vm704_vm9 = vweird.f32 %v1120_v23 }
 0x62c   : > { %vm705_vm11 = vmor %vm703_vm10, %vm704_vm9 }
 0x62d   : > { %v699_v25 = vmul.f32 %v1120_v23, %v698_v24  ;;  %825 = vmatpush.bf16.msra.mxu3 %v1022_v39 }
 0x62f   : > { %v700_v26 = vmul.f32 0.5, %v699_v25 }
 0x631   : > { %v701_v27 = vsub.f32 1.5, %v700_v26  ;;  %826 = vmatpush.bf16.msra.mxu3 %v1021_v40 }
 0x633   : > { %v702_v29 = vmul.f32 %v1120_v23, %v701_v27 }
 0x635   : > { %v706_v31 = vsel %vm705_vm11, %v1120_v23, %v702_v29  ;;  %827 = vmatpush.bf16.msra.mxu3 %v1020_v41 }
 0x636   : > { %v707_v32 = vmul.f32 %v706_v31, %v690_v15 }
 0x638   : > { %v709_v34 = vmul.f32 %v1095_v30, %v707_v32 }
 0x639   : > { %828 = vmatpush.bf16.msra.mxu3 %v1019_v42 }
 0x63a   : > { %v711_v35 = vadd.f32 %v1096_v33, %v709_v34 }
 0x63c   : > { %v712_v36 = vpack.c.bf16 %v711_v35, %v711_v35 }
 0x63e   : > { %974 = vmatmul.msk.bf16.vlgmr.msra.gmra.mxu2 %vm302_vm0, %v712_v36 }
 0x6c1   : > { %v742_v44 = vpop.f32.mrf.mxu2 }
 0x6c2   : > { %v743_v45 = vadd.f32 %v1097_v43, %v742_v44 }
 0x6c4   : > { %v746_v46 = vmul.f32 %v743_v45, %v743_v45 }
 0x6c6   : > { %v747_v47 = vmul.f32 %v746_v46, %v743_v45 }
 0x6c8   : > { %v748_v48 = vmul.f32 0.044715, %v747_v47 }
 0x6c9   : > { %v744_v49 = vpop.f32.mrf.mxu2 }
 0x6ca   : > { %v749_v50 = vadd.f32 %v748_v48, %v743_v45 }
 0x6cc   : > { %v750_v28 = vmul.f32 0.7978846, %v749_v50 }
 0x6ce   : > { %1121 = vtanh.f32 %v750_v28 }
 0x6d4   : > { %v1122_v52 = vpop.eup %1121 }
 0x6d5   : > { %v752_v53 = vadd.f32 1.0, %v1122_v52 }
 0x6d7   : > { %v753_v54 = vmul.f32 0.5, %v752_v53 }
 0x6d9   : > { %v754_v55 = vmul.f32 %v753_v54, %v743_v45 }
 0x6db   : > { %v755_v56 = vpack.c.bf16 %v754_v55, %v754_v55 }
 0x6dd   : > { %829 = vmatmul.bf16.vlgmr.msra.gmra.mxu3 %v755_v56 }
 0x760   : > { %v830_v58 = vpop.f32.mrf.mxu3 }
 0x761   : > { %v831_v59 = vadd.f32 %v1098_v57, %v830_v58 }
 0x763   : > { %v834_v60 = vadd.f32 %v831_v59, %v1408_v9 }
 0x765   : > { %835 = vst.msk [vmem:[%s286_s17] sm:$0xff] %vm302_vm0, %v834_v60 }
 0x766   : > { %1180 = shalt.err (!%p1177_p8)
}
 0x767   : > { %1031 = dma.vmem_to_hbm [thread:$0]  (%p1313_p5), %s850_s18, 128, %s852_s19, %s837_s20  }
 0x768   : > { %v832_v61 = vpop.f32.mrf.mxu3 }
 0x769 PF: > { %p1043_p9 = scmp.ge.s32.totalorder %s1219_s27, 2  ;;  %s863_s8 = sand.u32 1, %s1207_s24  }
 0x76a   : > { %s864_s14 = scalar_lea.sflag [#allocation4], %s863_s8 }
 0x76b   : > { %p1038_p10 = pnand %p1043_p9, %p1317_p6 }
 0x76d   : > { %p1039_p11 = pneg %p1038_p10 }
 0x76f   : > { %1202 = dma.done.wait (%p1039_p11), %s864_s14, 128  }
 0x770   : > { %1204 = vsyncadd (%p1039_p11), %s864_s14, 4294967168  ;;  %p18_p12 = scmp.ge.s32.totalorder %s1300_s30, 4   ;;  %s1491_s24 = smov %s1211_s25 }
 0x771   : > { %s1492_s25 = smov %s1215_s26  ;;  %s1493_s26 = smov %s1311_s10 }
 0x772   : > { %s1494_s27 = smov %s1300_s30  ;;  %20 = sbr.rel (!%p18_p12) target bundleno = 4 (0x4), region = 88 }
 0x777   :  { %870 = vsyncpa [#allocation3], 1 }
 0x778   :  { %872 = vsyncpa [#allocation3 + $0x1], 1 }
 0x779   :  { %873 = vsyncpa [#allocation4], 1 }
 0x77a   :  { %875 = vsyncpa [#allocation4 + $0x1], 1 }

</bundles_post_ra>
